<compile_context>
chip_gen: v6e
topology: v6e:2x2x1
jax: 0.10.0
libtpu: 0.0.40
codegen_flags: <defaults>
</compile_context>

<pallas_src>
import functools

import jax
import jax.numpy as jnp
from jax.experimental import pallas as pl
from jax.experimental.pallas import tpu as pltpu

_OUT_LANES = 128  # lane-dense layer-3 output width (q1 -> lane 0, q2 -> lane 1)


def _round_up(x, m):
    return ((x + m - 1) // m) * m


def _cdiv(a, b):
    return -(-a // b)


def _critic_kernel(s_ref, a_ref,
                   ws_ref, wa_ref, b1_ref,
                   w2_ref, w5_ref, b2_ref, b5_ref,
                   w3_ref, w6_ref, b3_ref,
                   q_ref):
    """One batch tile of the fused two-head critic.

    Layer 1 is fused across heads and concat-free (state @ Ws + action @ Wa).
    Layer 2 is two separate per-head matmuls (no zero blocks on the MXU).
    Layer 3 maps both heads into a single lane-dense (bt, 128) output tile.
    """
    cdt = ws_ref.dtype               # matmul input dtype (f32 or bf16)
    h1p = w2_ref.shape[0]            # padded per-head hidden width of layer 1

    s = s_ref[...].astype(cdt)
    a = a_ref[...].astype(cdt)

    # Fused layer 1 for both heads:  [state | action] @ [W1 || W4]
    h = jnp.dot(s, ws_ref[...], preferred_element_type=jnp.float32)
    h = h + jnp.dot(a, wa_ref[...], preferred_element_type=jnp.float32)
    h = jnp.maximum(h + b1_ref[...], 0.0)                     # (bt, 2*H1p) f32

    # Layer 2: per-head matmuls (the lane split at h1p is 128-aligned).
    h1 = h[:, :h1p].astype(cdt)
    h2 = h[:, h1p:].astype(cdt)
    g1 = jnp.maximum(
        jnp.dot(h1, w2_ref[...], preferred_element_type=jnp.float32)
        + b2_ref[...], 0.0)                                   # (bt, H2p) f32
    g2 = jnp.maximum(
        jnp.dot(h2, w5_ref[...], preferred_element_type=jnp.float32)
        + b5_ref[...], 0.0)

    # Layer 3: both heads into one lane-dense 128-wide output tile.
    q = jnp.dot(g1.astype(cdt), w3_ref[...], preferred_element_type=jnp.float32)
    q = q + jnp.dot(g2.astype(cdt), w6_ref[...], preferred_element_type=jnp.float32)
    q_ref[...] = q + b3_ref[...]                              # (bt, 128) f32


def init_params(key, state_dim, action_dim, hidden_layers):
    """Per-layer params matching nn.Linear shapes, stored (in, out) / (1, out)."""
    dims = [
        (state_dim + action_dim, hidden_layers[0]),  # l1
        (hidden_layers[0], hidden_layers[1]),        # l2
        (hidden_layers[1], 1),                       # l3
        (state_dim + action_dim, hidden_layers[0]),  # l4
        (hidden_layers[0], hidden_layers[1]),        # l5
        (hidden_layers[1], 1),                       # l6
    ]
    params = {}
    for i, (fan_in, fan_out) in enumerate(dims, start=1):
        key, kw, kb = jax.random.split(key, 3)
        bound = 1.0 / jnp.sqrt(fan_in)
        params[f"w{i}"] = jax.random.uniform(
            kw, (fan_in, fan_out), jnp.float32, -bound, bound)
        params[f"b{i}"] = jax.random.uniform(
            kb, (1, fan_out), jnp.float32, -bound, bound)
    return params


def pack_params(params, state_dim, weight_dtype=jnp.float32):
    """Fuse / pad the two Q-heads' params for the kernel.

    Per-head hidden widths are zero-padded up to a multiple of 128 lanes;
    layer 3 is padded to 128 output lanes (q1 -> lane 0, q2 -> lane 1).
    Weights are stored in `weight_dtype` (bf16 recommended on v6e/v7x);
    biases stay f32 because bias-add / ReLU are done in f32 in the kernel.
    """
    S = state_dim
    SA, H1 = params["w1"].shape
    H2 = params["w2"].shape[1]
    H1p = _round_up(H1, 128)
    H2p = _round_up(H2, 128)

    def pad(x, rows, cols):
        out = jnp.zeros((rows, cols), jnp.float32)
        return out.at[:x.shape[0], :x.shape[1]].set(x)

    # Layer 1: [W1 || W4] along out-features, rows split into state / action.
    w14 = jnp.concatenate([pad(params["w1"], SA, H1p),
                           pad(params["w4"], SA, H1p)], axis=1)   # (SA, 2*H1p)
    ws = w14[:S].astype(weight_dtype)
    wa = w14[S:].astype(weight_dtype)
    b1 = jnp.concatenate([pad(params["b1"], 1, H1p),
                          pad(params["b4"], 1, H1p)], axis=1)     # (1, 2*H1p)

    # Layer 2: two separate per-head weights (no block-diagonal zero blocks).
    w2 = pad(params["w2"], H1p, H2p).astype(weight_dtype)
    w5 = pad(params["w5"], H1p, H2p).astype(weight_dtype)
    b2 = pad(params["b2"], 1, H2p)
    b5 = pad(params["b5"], 1, H2p)

    # Layer 3: 128 output lanes; q1 in lane 0 (head 1), q2 in lane 1 (head 2).
    w3 = jnp.zeros((H2p, _OUT_LANES), jnp.float32)
    w3 = w3.at[:H2, 0:1].set(params["w3"]).astype(weight_dtype)
    w6 = jnp.zeros((H2p, _OUT_LANES), jnp.float32)
    w6 = w6.at[:H2, 1:2].set(params["w6"]).astype(weight_dtype)
    b3 = jnp.zeros((1, _OUT_LANES), jnp.float32)
    b3 = b3.at[:, 0:1].set(params["b3"]).at[:, 1:2].set(params["b6"])

    return dict(ws=ws, wa=wa, b1=b1, w2=w2, w5=w5, b2=b2, b5=b5,
                w3=w3, w6=w6, b3=b3)


@functools.partial(jax.jit, static_argnames=("block_b",))
def critic_forward(state, action, fused, *, block_b=1024):
    """Pallas implementation of Critic.forward -> (q1, q2), each (B, 1)."""
    B, S = state.shape
    A = action.shape[1]
    H1p2 = fused["ws"].shape[1]        # 2 * H1p
    H1p = fused["w2"].shape[0]
    H2p = fused["w2"].shape[1]
    OUT = fused["w3"].shape[1]         # 128

    # Batch tiling: tiles are multiples of 128 rows; avoid rounding B up by
    # nearly a full tile, and use >= 2 grid steps whenever the batch allows so
    # the "parallel" axis can shard across v7x's 2 TensorCores.
    m = _round_up(B, 128) // 128                     # batch size in 128-row blocks
    n_steps = max(1, _cdiv(m * 128, block_b))
    if m >= 2:
        n_steps = max(n_steps, 2)
    bt = 128 * _cdiv(m, n_steps)                     # tile: multiple of 128 rows
    Bp = bt * _cdiv(m * 128, bt)                     # padded batch
    if Bp != B:
        state = jnp.pad(state, ((0, Bp - B), (0, 0)))
        action = jnp.pad(action, ((0, Bp - B), (0, 0)))

    def resident(arr):  # weights / biases: constant block index -> DMA'd once
        return pl.BlockSpec(arr.shape, lambda i: (0, 0))

    # Dense MXU work actually performed (layer 2 split, layer 3 128 lanes wide).
    flops = 2 * Bp * ((S + A) * H1p2 + 2 * H1p * H2p + 2 * H2p * OUT)
    bytes_accessed = (
        Bp * (S + A) * state.dtype.itemsize                       # input tiles
        + sum(int(v.size) * v.dtype.itemsize for v in fused.values())
        + Bp * OUT * 4)                                           # output tiles

    out = pl.pallas_call(
        _critic_kernel,
        out_shape=jax.ShapeDtypeStruct((Bp, OUT), jnp.float32),
        grid=(Bp // bt,),
        in_specs=[
            pl.BlockSpec((bt, S), lambda i: (i, 0)),    # state tile
            pl.BlockSpec((bt, A), lambda i: (i, 0)),    # action tile
            resident(fused["ws"]), resident(fused["wa"]), resident(fused["b1"]),
            resident(fused["w2"]), resident(fused["w5"]),
            resident(fused["b2"]), resident(fused["b5"]),
            resident(fused["w3"]), resident(fused["w6"]), resident(fused["b3"]),
        ],
        out_specs=pl.BlockSpec((bt, OUT), lambda i: (i, 0)),
        compiler_params=pltpu.CompilerParams(
            dimension_semantics=("parallel",),
            vmem_limit_bytes=48 * 1024 * 1024,   # headroom on v7x (64 MiB/TC)
        ),
        cost_estimate=pl.CostEstimate(
            flops=flops, transcendentals=0, bytes_accessed=bytes_accessed),
    )(state, action,
      fused["ws"], fused["wa"], fused["b1"],
      fused["w2"], fused["w5"], fused["b2"], fused["b5"],
      fused["w3"], fused["w6"], fused["b3"])

    # q1 in lane 0, q2 in lane 1 of the lane-dense output slab.
    return out[:B, 0:1], out[:B, 1:2]


def critic_forward_ref(state, action, params, compute_dtype=jnp.float32):
    """Pure-JAX reference (unfused two heads) for correctness checking."""
    cdt = compute_dtype
    sa = jnp.concatenate([state, action], axis=1)

    def head(w1, b1, w2, b2, w3, b3):
        h = jnp.maximum(
            jnp.dot(sa.astype(cdt), w1.astype(cdt),
                    preferred_element_type=jnp.float32) + b1, 0.0)
        g = jnp.maximum(
            jnp.dot(h.astype(cdt), w2.astype(cdt),
                    preferred_element_type=jnp.float32) + b2, 0.0)
        return jnp.dot(g.astype(cdt), w3.astype(cdt),
                       preferred_element_type=jnp.float32) + b3

    q1 = head(params["w1"], params["b1"], params["w2"], params["b2"],
              params["w3"], params["b3"])
    q2 = head(params["w4"], params["b4"], params["w5"], params["b5"],
              params["w6"], params["b6"])
    return q1, q2


if __name__ == "__main__":
    B, state_dim, action_dim = 2, 8, 4
    hidden_layers = [32, 32]

    key = jax.random.PRNGKey(0)
    key, ks, ka, kp = jax.random.split(key, 4)
    state = jax.random.normal(ks, (B, state_dim), jnp.float32)
    action = jax.random.normal(ka, (B, action_dim), jnp.float32)
    params = init_params(kp, state_dim, action_dim, hidden_layers)

    # f32 weights: tight check against the unfused reference.
    fused32 = pack_params(params, state_dim, weight_dtype=jnp.float32)
    q1, q2 = critic_forward(state, action, fused32)
    jax.block_until_ready((q1, q2))
    q1_ref, q2_ref = critic_forward_ref(state, action, params)
    assert q1.shape == (B, 1) and q2.shape == (B, 1)
    assert jnp.allclose(q1, q1_ref, atol=1e-5, rtol=1e-5)
    assert jnp.allclose(q2, q2_ref, atol=1e-5, rtol=1e-5)

    # bf16 weights (recommended on v6e/v7x): f32 accumulation, checked against
    # a reference that applies the same bf16 casts.
    fused16 = pack_params(params, state_dim, weight_dtype=jnp.bfloat16)
    q1b, q2b = critic_forward(state, action, fused16)
    jax.block_until_ready((q1b, q2b))
    q1b_ref, q2b_ref = critic_forward_ref(state, action, params,
                                          compute_dtype=jnp.bfloat16)
    assert jnp.allclose(q1b, q1b_ref, atol=1e-2, rtol=1e-2)
    assert jnp.allclose(q2b, q2b_ref, atol=1e-2, rtol=1e-2)

    print("KERNEL_OK")
</pallas_src>

<mosaic_0001>
module attributes {stable_mosaic.version = 11 : i64} {
  func.func @_critic_kernel(%arg0: i32, %arg1: memref<128x8xf32, #tpu.memory_space<vmem>>, %arg2: memref<128x4xf32, #tpu.memory_space<vmem>>, %arg3: memref<8x256xf32, #tpu.memory_space<vmem>>, %arg4: memref<4x256xf32, #tpu.memory_space<vmem>>, %arg5: memref<1x256xf32, #tpu.memory_space<vmem>>, %arg6: memref<128x128xf32, #tpu.memory_space<vmem>>, %arg7: memref<128x128xf32, #tpu.memory_space<vmem>>, %arg8: memref<1x128xf32, #tpu.memory_space<vmem>>, %arg9: memref<1x128xf32, #tpu.memory_space<vmem>>, %arg10: memref<128x128xf32, #tpu.memory_space<vmem>>, %arg11: memref<128x128xf32, #tpu.memory_space<vmem>>, %arg12: memref<1x128xf32, #tpu.memory_space<vmem>>, %arg13: memref<128x128xf32, #tpu.memory_space<vmem>>) attributes {dimension_semantics = [#tpu.dimension_semantics<parallel>], iteration_bounds = array<i64: 1>, scalar_prefetch = 0 : i64, scratch_operands = 0 : i64, tpu.core_type = #tpu.core_type<tc>, window_params = [{transform_indices = @transform_0, window_bounds = array<i64: 128, 8>}, {transform_indices = @transform_1, window_bounds = array<i64: 128, 4>}, {pipeline_mode = #tpu.pipeline_mode<synchronous>, transform_indices = @transform_2, window_bounds = array<i64: 8, 256>}, {pipeline_mode = #tpu.pipeline_mode<synchronous>, transform_indices = @transform_3, window_bounds = array<i64: 4, 256>}, {pipeline_mode = #tpu.pipeline_mode<synchronous>, transform_indices = @transform_4, window_bounds = array<i64: 1, 256>}, {pipeline_mode = #tpu.pipeline_mode<synchronous>, transform_indices = @transform_5, window_bounds = array<i64: 128, 128>}, {pipeline_mode = #tpu.pipeline_mode<synchronous>, transform_indices = @transform_6, window_bounds = array<i64: 128, 128>}, {pipeline_mode = #tpu.pipeline_mode<synchronous>, transform_indices = @transform_7, window_bounds = array<i64: 1, 128>}, {pipeline_mode = #tpu.pipeline_mode<synchronous>, transform_indices = @transform_8, window_bounds = array<i64: 1, 128>}, {pipeline_mode = #tpu.pipeline_mode<synchronous>, transform_indices = @transform_9, window_bounds = array<i64: 128, 128>}, {pipeline_mode = #tpu.pipeline_mode<synchronous>, transform_indices = @transform_10, window_bounds = array<i64: 128, 128>}, {pipeline_mode = #tpu.pipeline_mode<synchronous>, transform_indices = @transform_11, window_bounds = array<i64: 1, 128>}, {transform_indices = @transform_12, window_bounds = array<i64: 128, 128>}]} {
    %c0 = arith.constant 0 : index
    %c0_0 = arith.constant 0 : index
    %0 = vector.load %arg1[%c0, %c0_0] : memref<128x8xf32, #tpu.memory_space<vmem>>, vector<128x8xf32>
    %c0_1 = arith.constant 0 : index
    %c0_2 = arith.constant 0 : index
    %1 = vector.load %arg2[%c0_1, %c0_2] : memref<128x4xf32, #tpu.memory_space<vmem>>, vector<128x4xf32>
    %c0_3 = arith.constant 0 : index
    %c0_4 = arith.constant 0 : index
    %2 = vector.load %arg3[%c0_3, %c0_4] : memref<8x256xf32, #tpu.memory_space<vmem>>, vector<8x256xf32>
    %cst = arith.constant dense<0.000000e+00> : vector<128x256xf32>
    %3 = tpu.matmul %0, %2, %cst {dimension_numbers = #tpu.dot_dimension_numbers<[1], [0], [0], [1], [0, 0, 1, 1], [], []>} : vector<128x8xf32>, vector<8x256xf32>, vector<128x256xf32> -> vector<128x256xf32>
    %c0_5 = arith.constant 0 : index
    %c0_6 = arith.constant 0 : index
    %4 = vector.load %arg4[%c0_5, %c0_6] : memref<4x256xf32, #tpu.memory_space<vmem>>, vector<4x256xf32>
    %cst_7 = arith.constant dense<0.000000e+00> : vector<128x256xf32>
    %5 = tpu.matmul %1, %4, %cst_7 {dimension_numbers = #tpu.dot_dimension_numbers<[1], [0], [0], [1], [0, 0, 1, 1], [], []>} : vector<128x4xf32>, vector<4x256xf32>, vector<128x256xf32> -> vector<128x256xf32>
    %6 = arith.addf %3, %5 : vector<128x256xf32>
    %c0_8 = arith.constant 0 : index
    %c0_9 = arith.constant 0 : index
    %7 = vector.load %arg5[%c0_8, %c0_9] : memref<1x256xf32, #tpu.memory_space<vmem>>, vector<1x256xf32>
    %8 = vector.broadcast %7 : vector<1x256xf32> to vector<128x256xf32>
    %9 = arith.addf %6, %8 : vector<128x256xf32>
    %cst_10 = arith.constant 0.000000e+00 : f32
    %10 = vector.broadcast %cst_10 : f32 to vector<128x256xf32>
    %11 = arith.maximumf %9, %10 : vector<128x256xf32>
    %12 = vector.extract_strided_slice %11 {offsets = [0, 0], sizes = [128, 128], strides = [1, 1]} : vector<128x256xf32> to vector<128x128xf32>
    %13 = vector.extract_strided_slice %11 {offsets = [0, 128], sizes = [128, 128], strides = [1, 1]} : vector<128x256xf32> to vector<128x128xf32>
    %c0_11 = arith.constant 0 : index
    %c0_12 = arith.constant 0 : index
    %14 = vector.load %arg6[%c0_11, %c0_12] : memref<128x128xf32, #tpu.memory_space<vmem>>, vector<128x128xf32>
    %cst_13 = arith.constant dense<0.000000e+00> : vector<128x128xf32>
    %15 = tpu.matmul %12, %14, %cst_13 {dimension_numbers = #tpu.dot_dimension_numbers<[1], [0], [0], [1], [0, 0, 1, 1], [], []>} : vector<128x128xf32>, vector<128x128xf32>, vector<128x128xf32> -> vector<128x128xf32>
    %c0_14 = arith.constant 0 : index
    %c0_15 = arith.constant 0 : index
    %16 = vector.load %arg8[%c0_14, %c0_15] : memref<1x128xf32, #tpu.memory_space<vmem>>, vector<1x128xf32>
    %17 = vector.broadcast %16 : vector<1x128xf32> to vector<128x128xf32>
    %18 = arith.addf %15, %17 : vector<128x128xf32>
    %cst_16 = arith.constant 0.000000e+00 : f32
    %19 = vector.broadcast %cst_16 : f32 to vector<128x128xf32>
    %20 = arith.maximumf %18, %19 : vector<128x128xf32>
    %c0_17 = arith.constant 0 : index
    %c0_18 = arith.constant 0 : index
    %21 = vector.load %arg7[%c0_17, %c0_18] : memref<128x128xf32, #tpu.memory_space<vmem>>, vector<128x128xf32>
    %cst_19 = arith.constant dense<0.000000e+00> : vector<128x128xf32>
    %22 = tpu.matmul %13, %21, %cst_19 {dimension_numbers = #tpu.dot_dimension_numbers<[1], [0], [0], [1], [0, 0, 1, 1], [], []>} : vector<128x128xf32>, vector<128x128xf32>, vector<128x128xf32> -> vector<128x128xf32>
    %c0_20 = arith.constant 0 : index
    %c0_21 = arith.constant 0 : index
    %23 = vector.load %arg9[%c0_20, %c0_21] : memref<1x128xf32, #tpu.memory_space<vmem>>, vector<1x128xf32>
    %24 = vector.broadcast %23 : vector<1x128xf32> to vector<128x128xf32>
    %25 = arith.addf %22, %24 : vector<128x128xf32>
    %cst_22 = arith.constant 0.000000e+00 : f32
    %26 = vector.broadcast %cst_22 : f32 to vector<128x128xf32>
    %27 = arith.maximumf %25, %26 : vector<128x128xf32>
    %c0_23 = arith.constant 0 : index
    %c0_24 = arith.constant 0 : index
    %28 = vector.load %arg10[%c0_23, %c0_24] : memref<128x128xf32, #tpu.memory_space<vmem>>, vector<128x128xf32>
    %cst_25 = arith.constant dense<0.000000e+00> : vector<128x128xf32>
    %29 = tpu.matmul %20, %28, %cst_25 {dimension_numbers = #tpu.dot_dimension_numbers<[1], [0], [0], [1], [0, 0, 1, 1], [], []>} : vector<128x128xf32>, vector<128x128xf32>, vector<128x128xf32> -> vector<128x128xf32>
    %c0_26 = arith.constant 0 : index
    %c0_27 = arith.constant 0 : index
    %30 = vector.load %arg11[%c0_26, %c0_27] : memref<128x128xf32, #tpu.memory_space<vmem>>, vector<128x128xf32>
    %cst_28 = arith.constant dense<0.000000e+00> : vector<128x128xf32>
    %31 = tpu.matmul %27, %30, %cst_28 {dimension_numbers = #tpu.dot_dimension_numbers<[1], [0], [0], [1], [0, 0, 1, 1], [], []>} : vector<128x128xf32>, vector<128x128xf32>, vector<128x128xf32> -> vector<128x128xf32>
    %32 = arith.addf %29, %31 : vector<128x128xf32>
    %c0_29 = arith.constant 0 : index
    %c0_30 = arith.constant 0 : index
    %33 = vector.load %arg12[%c0_29, %c0_30] : memref<1x128xf32, #tpu.memory_space<vmem>>, vector<1x128xf32>
    %34 = vector.broadcast %33 : vector<1x128xf32> to vector<128x128xf32>
    %35 = arith.addf %32, %34 : vector<128x128xf32>
    %c0_31 = arith.constant 0 : index
    %c0_32 = arith.constant 0 : index
    %36 = vector.load %arg13[%c0_31, %c0_32] : memref<128x128xf32, #tpu.memory_space<vmem>>, vector<128x128xf32>
    tpu.vector_store %arg13[%c0_31, %c0_32], %35 {strides = array<i32>} : memref<128x128xf32, #tpu.memory_space<vmem>>, vector<128x128xf32>,
    return
  }
  func.func @transform_0(%arg0: i32) -> (i32, i32) {
    %c0_i32 = arith.constant 0 : i32
    %c0_i32_0 = arith.constant 0 : i32
    return %arg0, %c0_i32 : i32, i32
  }
  func.func @transform_1(%arg0: i32) -> (i32, i32) {
    %c0_i32 = arith.constant 0 : i32
    %c0_i32_0 = arith.constant 0 : i32
    return %arg0, %c0_i32 : i32, i32
  }
  func.func @transform_2(%arg0: i32) -> (i32, i32) {
    %c0_i32 = arith.constant 0 : i32
    %c0_i32_0 = arith.constant 0 : i32
    %c0_i32_1 = arith.constant 0 : i32
    return %c0_i32, %c0_i32_0 : i32, i32
  }
  func.func @transform_3(%arg0: i32) -> (i32, i32) {
    %c0_i32 = arith.constant 0 : i32
    %c0_i32_0 = arith.constant 0 : i32
    %c0_i32_1 = arith.constant 0 : i32
    return %c0_i32, %c0_i32_0 : i32, i32
  }
  func.func @transform_4(%arg0: i32) -> (i32, i32) {
    %c0_i32 = arith.constant 0 : i32
    %c0_i32_0 = arith.constant 0 : i32
    %c0_i32_1 = arith.constant 0 : i32
    return %c0_i32, %c0_i32_0 : i32, i32
  }
  func.func @transform_5(%arg0: i32) -> (i32, i32) {
    %c0_i32 = arith.constant 0 : i32
    %c0_i32_0 = arith.constant 0 : i32
    %c0_i32_1 = arith.constant 0 : i32
    return %c0_i32, %c0_i32_0 : i32, i32
  }
  func.func @transform_6(%arg0: i32) -> (i32, i32) {
    %c0_i32 = arith.constant 0 : i32
    %c0_i32_0 = arith.constant 0 : i32
    %c0_i32_1 = arith.constant 0 : i32
    return %c0_i32, %c0_i32_0 : i32, i32
  }
  func.func @transform_7(%arg0: i32) -> (i32, i32) {
    %c0_i32 = arith.constant 0 : i32
    %c0_i32_0 = arith.constant 0 : i32
    %c0_i32_1 = arith.constant 0 : i32
    return %c0_i32, %c0_i32_0 : i32, i32
  }
  func.func @transform_8(%arg0: i32) -> (i32, i32) {
    %c0_i32 = arith.constant 0 : i32
    %c0_i32_0 = arith.constant 0 : i32
    %c0_i32_1 = arith.constant 0 : i32
    return %c0_i32, %c0_i32_0 : i32, i32
  }
  func.func @transform_9(%arg0: i32) -> (i32, i32) {
    %c0_i32 = arith.constant 0 : i32
    %c0_i32_0 = arith.constant 0 : i32
    %c0_i32_1 = arith.constant 0 : i32
    return %c0_i32, %c0_i32_0 : i32, i32
  }
  func.func @transform_10(%arg0: i32) -> (i32, i32) {
    %c0_i32 = arith.constant 0 : i32
    %c0_i32_0 = arith.constant 0 : i32
    %c0_i32_1 = arith.constant 0 : i32
    return %c0_i32, %c0_i32_0 : i32, i32
  }
  func.func @transform_11(%arg0: i32) -> (i32, i32) {
    %c0_i32 = arith.constant 0 : i32
    %c0_i32_0 = arith.constant 0 : i32
    %c0_i32_1 = arith.constant 0 : i32
    return %c0_i32, %c0_i32_0 : i32, i32
  }
  func.func @transform_12(%arg0: i32) -> (i32, i32) {
    %c0_i32 = arith.constant 0 : i32
    %c0_i32_0 = arith.constant 0 : i32
    return %arg0, %c0_i32 : i32, i32
  }
}

</mosaic_0001>

<bundles_post_ra>
// kernel: critic_forward.1
= control target key start
LH: loop header
LB: loop body
LE: loop exit
PB: predicated region body
PF: predicated region fallthrough
CT: control target
= control target key end

     0   :  { %17 = vsyncpa [#allocation3], 0  ;;  %s2418_s0 = inlined_call_operand.vmem [shape: f32[128,8], index: 0, kind: input, shape index: {}]   ;;  %s2419_s1 = inlined_call_operand.vmem [shape: f32[128,4], index: 1, kind: input, shape index: {}]   ;;  %s2420_s2 = inlined_call_operand.vmem [shape: f32[8,256], index: 2, kind: input, shape index: {}]   ;;  %s2421_s3 = inlined_call_operand.vmem [shape: f32[4,256], index: 3, kind: input, shape index: {}]   ;;  %s2422_s4 = inlined_call_operand.hbm [shape: f32[1,256], index: 4, kind: input, shape index: {}]   ;;  %s2423_s5 = inlined_call_operand.vmem [shape: f32[128,128], index: 5, kind: input, shape index: {}]   ;;  %s2424_s6 = inlined_call_operand.vmem [shape: f32[128,128], index: 6, kind: input, shape index: {}]   ;;  %s2425_s7 = inlined_call_operand.hbm [shape: f32[1,128], index: 7, kind: input, shape index: {}]   ;;  %s2426_s8 = inlined_call_operand.hbm [shape: f32[1,128], index: 8, kind: input, shape index: {}]   ;;  %s2427_s9 = inlined_call_operand.hbm [shape: f32[128,128], index: 9, kind: input, shape index: {}]   ;;  %s2428_s10 = inlined_call_operand.hbm [shape: f32[128,128], index: 10, kind: input, shape index: {}]   ;;  %s2429_s11 = inlined_call_operand.hbm [shape: f32[1,128], index: 11, kind: input, shape index: {}]   ;;  %s2430_s12 = inlined_call_operand.vmem [shape: f32[128,128], index: 12, kind: output, shape index: {}]  }
   0x1   :  { %18 = vsyncpa [#allocation5], 0 }
   0x2   :  { %19 = vsyncpa [#allocation8], 0 }
   0x3   :  { %20 = vsyncpa [#allocation11], 0  ;;  %s1917_s21 = smov [#allocation4]   ;;  %s1918_s23 = smov [#allocation7]  }
   0x4   :  { %s49_s22 = sshll.u32 %s1917_s21, 4  ;;  %s68_s24 = sshll.u32 %s1918_s23, 4  ;;  %s50_s22 = int_to_ptr.vmem [resolvable:$true] %s49_s22  ;;  %s69_s24 = int_to_ptr.vmem [resolvable:$true] %s68_s24 }
   0x5   :  { %s1797_s25 = scalar_lea.vmem %s50_s22, 16  ;;  %s1801_s26 = scalar_lea.vmem %s50_s22, 32 }
   0x6   :  { %p1798_p0 = scmp.ne.s32.totalorder %s50_s22, %s1797_s25  ;;  %p1802_p1 = scmp.lt.s32.totalorder %s50_s22, %s50_s22 }
   0x7   :  { %p1803_p2 = scmp.lt.s32.totalorder %s1801_s26, %s1797_s25 }
   0x9   :  { %p1804_p3 = por %p1803_p2, %p1802_p1 }
   0xb   :  { %p1805_p4 = pnand %p1804_p3, %p1798_p0 }
   0xd   :  { %1808 = shalt.err (!%p1805_p4)
}
   0xe   :  { %52 = dma.hbm_to_vmem [thread:$0]  %s2425_s7, 16, %s50_s22, [#allocation5]  }
   0xf   :  { %s1817_s29 = scalar_lea.vmem %s69_s24, 2048  ;;  %p1822_p6 = scmp.lt.s32.totalorder %s69_s24, %s69_s24 }
  0x10   :  { %p1818_p5 = scmp.ne.s32.totalorder %s69_s24, %s1817_s29  ;;  %p1823_p7 = scmp.lt.s32.totalorder %s1817_s29, %s1817_s29 }
  0x12   :  { %p1824_p8 = por %p1823_p7, %p1822_p6 }
  0x14   :  { %p1825_p9 = pnand %p1824_p8, %p1818_p5 }
  0x16   :  { %1828 = shalt.err (!%p1825_p9)
}
  0x17   :  { %s1919_s30 = smov 128   ;;  %s1920_s13 = smov 8  }
  0x18   :  { %74 = dma.hbm_to_vmem [thread:$0]  %s2427_s9, 2048, %s69_s24, [#allocation8], %s1919_s30, %s1919_s30, %s1920_s13  }
  0x19   :  { %s1921_s16 = smov [#allocation2]   ;;  %s1922_s18 = smov [#allocation6]  }
  0x1a   :  { %s35_s17 = sshll.u32 %s1921_s16, 4  ;;  %s59_s7 = sshll.u32 %s1922_s18, 4  ;;  %s36_s17 = int_to_ptr.vmem [resolvable:$true] %s35_s17  ;;  %s60_s7 = int_to_ptr.vmem [resolvable:$true] %s59_s7 }
  0x1b   :  { %s1837_s19 = scalar_lea.vmem %s36_s17, 32  ;;  %p1842_p11 = scmp.lt.s32.totalorder %s36_s17, %s36_s17 }
  0x1c   :  { %p1838_p10 = scmp.ne.s32.totalorder %s36_s17, %s1837_s19  ;;  %p1843_p12 = scmp.lt.s32.totalorder %s1837_s19, %s1837_s19 }
  0x1e   :  { %p1844_p13 = por %p1843_p12, %p1842_p11 }
  0x20   :  { %p1845_p0 = pnand %p1844_p13, %p1838_p10 }
  0x22   :  { %1848 = shalt.err (!%p1845_p0)
}
  0x23   :  { %38 = dma.hbm_to_vmem [thread:$0]  %s2422_s4, 32, %s36_s17, [#allocation3]  }
  0x24   :  { %s1857_s22 = scalar_lea.vmem %s60_s7, 16  ;;  %s1861_s9 = scalar_lea.vmem %s60_s7, 32 }
  0x25   :  { %p1858_p1 = scmp.ne.s32.totalorder %s60_s7, %s1857_s22  ;;  %p1862_p2 = scmp.lt.s32.totalorder %s60_s7, %s60_s7 }
  0x26   :  { %p1863_p3 = scmp.lt.s32.totalorder %s1861_s9, %s1857_s22 }
  0x28   :  { %p1864_p4 = por %p1863_p3, %p1862_p2 }
  0x2a   :  { %p1865_p5 = pnand %p1864_p4, %p1858_p1 }
  0x2c   :  { %1868 = shalt.err (!%p1865_p5)
}
  0x2d   :  { %62 = dma.hbm_to_vmem [thread:$0]  %s2426_s8, 16, %s60_s7, [#allocation5]  }
  0x2e   :  { %s1923_s25 = smov [#allocation9]   ;;  %s1924_s27 = smov [#allocation10]  }
  0x2f   :  { %s80_s26 = sshll.u32 %s1923_s25, 4  ;;  %s93_s28 = sshll.u32 %s1924_s27, 4  ;;  %s81_s26 = int_to_ptr.vmem [resolvable:$true] %s80_s26  ;;  %s94_s28 = int_to_ptr.vmem [resolvable:$true] %s93_s28 }
  0x30   :  { %s1877_s29 = scalar_lea.vmem %s81_s26, 2048  ;;  %p1882_p7 = scmp.lt.s32.totalorder %s81_s26, %s81_s26 }
  0x31   :  { %p1878_p6 = scmp.ne.s32.totalorder %s81_s26, %s1877_s29  ;;  %p1883_p8 = scmp.lt.s32.totalorder %s1877_s29, %s1877_s29 }
  0x33   :  { %p1884_p9 = por %p1883_p8, %p1882_p7 }
  0x35   :  { %p1885_p10 = pnand %p1884_p9, %p1878_p6 }
  0x37   :  { %1888 = shalt.err (!%p1885_p10)
}
  0x38   :  { %86 = dma.hbm_to_vmem [thread:$0]  %s2428_s10, 2048, %s81_s26, [#allocation8], %s1919_s30, %s1919_s30, %s1920_s13  }
  0x39   :  { %s1897_s8 = scalar_lea.vmem %s94_s28, 16  ;;  %s1901_s15 = scalar_lea.vmem %s94_s28, 32 }
  0x3a   :  { %p1898_p11 = scmp.ne.s32.totalorder %s94_s28, %s1897_s8  ;;  %p1902_p12 = scmp.lt.s32.totalorder %s94_s28, %s94_s28 }
  0x3b   :  { %p1903_p13 = scmp.lt.s32.totalorder %s1901_s15, %s1897_s8 }
  0x3d   :  { %p1904_p0 = por %p1903_p13, %p1902_p12 }
  0x3f   :  { %p1905_p1 = pnand %p1904_p0, %p1898_p11 }
  0x41   :  { %1908 = shalt.err (!%p1905_p1)
}
  0x42   :  { %96 = dma.hbm_to_vmem [thread:$0]  %s2429_s11, 16, %s94_s28, [#allocation11]  }
  0x43   :  { %1909 = dma.done.wait [#allocation3], 32  }
  0x44   :  { %1910 = vsyncadd [#allocation3], 4294967264 }
  0x45   :  { %1911 = dma.done.wait [#allocation5], 32  }
  0x46   :  { %1912 = vsyncadd [#allocation5], 4294967264 }
  0x47   :  { %1913 = dma.done.wait [#allocation8], 4096  }
  0x48   :  { %1914 = vsyncadd [#allocation8], 4294963200 }
  0x49   :  { %1915 = dma.done.wait [#allocation11], 16  }
  0x4a   :  { %1916 = vsyncadd [#allocation11], 4294967280  ;;  %v1925_v0 = vmov 0.0   ;;  %v148_v1 = vld [vmem:[%s2420_s2 + $0x8] sm:$0xff]  ;;  %v147_v2 = vld [vmem:[%s2420_s2] sm:$0xff]  ;;  %vm201_vm0 = vcmask 1043456  }
  0x4b   :  { %480 = vmatprep.mubr.f32.mxu1 %v1925_v0  ;;  %270 = vmatprep.mubr.f32.mxu0 %v1925_v0  ;;  %v149_v3 = vld [vmem:[%s2421_s3] sm:$0xff]  ;;  %vm367_vm1 = vcmask 64512   ;;  %vm152_vm2 = vcmask 31744   ;;  %v116_v7 = vld [vmem:[%s2418_s0 + $0x8] sm:$0xff]  ;;  %v117_v9 = vld [vmem:[%s2418_s0 + $0x10] sm:$0xff] }
  0x4c   :  { %446 = vmatprep.subr.mxu1 %v148_v1  ;;  %v151_v4 = vcombine.high %v149_v3, %v149_v3  ;;  %v115_v5 = vld [vmem:[%s2418_s0] sm:$0xff]  ;;  %v132_v8 = vld [vmem:[%s2419_s1 + $0x8] sm:$0xff]  ;;  %v133_v10 = vld [vmem:[%s2419_s1 + $0x10] sm:$0xff] }
  0x4d   :  { %447 = vmatpush1.msra.mxu1 %v147_v2  ;;  %v131_v6 = vld [vmem:[%s2419_s1] sm:$0xff]  ;;  %v668_v11 = vld [vmem:[%s2423_s5 + $0x78] sm:$0xff]  ;;  %v667_v14 = vld [vmem:[%s2423_s5 + $0x70] sm:$0xff] }
  0x4e   :  { %1390 = vmatprep.subr.msk.mxu0 %vm201_vm0, %v151_v4  ;;  %1408 = vmatmul.mubr.msk.f32.vlgmr.msra.gmra.mxu1 %vm367_vm1, %v115_v5  ;;  %v118_v12 = vld [vmem:[%s2418_s0 + $0x18] sm:$0xff]  ;;  %v851_v16 = vld [vmem:[%s2424_s6 + $0x70] sm:$0xff]  ;;  %v119_v17 = vld [vmem:[%s2418_s0 + $0x20] sm:$0xff] }
  0x4f   :  { %1391 = vmatpush1.msk.msra.mxu0 %vm201_vm0, %v149_v3  ;;  %486 = vmatprep.mubr.f32.mxu1 %v1925_v0  ;;  %v852_v13 = vld [vmem:[%s2424_s6 + $0x78] sm:$0xff]  ;;  %v666_v18 = vld [vmem:[%s2423_s5 + $0x68] sm:$0xff]  ;;  %v135_v19 = vld [vmem:[%s2419_s1 + $0x20] sm:$0xff] }
  0x50   :  { %1392 = vmatmul.mubr.msk.f32.vlgmr.msra.gmra.mxu0 %vm152_vm2, %v131_v6  ;;  %1555 = vmatprep.subr.mxu0 %v668_v11  ;;  %v134_v15 = vld [vmem:[%s2419_s1 + $0x18] sm:$0xff]  ;;  %v850_v20 = vld [vmem:[%s2424_s6 + $0x68] sm:$0xff]  ;;  %v665_v22 = vld [vmem:[%s2423_s5 + $0x60] sm:$0xff] }
  0x51   :  { %276 = vmatprep.mubr.f32.mxu0 %v1925_v0  ;;  %1611 = vmatprep.subr.mxu1 %v852_v13  ;;  %v120_v21 = vld [vmem:[%s2418_s0 + $0x28] sm:$0xff]  ;;  %v849_v24 = vld [vmem:[%s2424_s6 + $0x60] sm:$0xff]  ;;  %v121_v25 = vld [vmem:[%s2418_s0 + $0x30] sm:$0xff] }
  0x52   :  { %1409 = vmatmul.mubr.msk.f32.gmra.mxu1 %vm367_vm1, %v116_v7  ;;  %1556 = vmatpush3.msra.mxu0 %v668_v11  ;;  %v136_v23 = vld [vmem:[%s2419_s1 + $0x28] sm:$0xff]  ;;  %v664_v26 = vld [vmem:[%s2423_s5 + $0x58] sm:$0xff]  ;;  %v137_v27 = vld [vmem:[%s2419_s1 + $0x30] sm:$0xff]  ;;  %v579_v7 = vlaneseq }
  0x53   :  { %492 = vmatprep.mubr.f32.mxu1 %v1925_v0  ;;  %1557 = vmatprep.subr.mxu0 %v667_v14  ;;  %v663_v28 = vld [vmem:[%s2423_s5 + $0x50] sm:$0xff]  ;;  %v122_v29 = vld [vmem:[%s2418_s0 + $0x38] sm:$0xff]  ;;  %v662_v32 = vld [vmem:[%s2423_s5 + $0x48] sm:$0xff] }
  0x54   :  { %1393 = vmatmul.mubr.msk.f32.gmra.mxu0 %vm152_vm2, %v132_v8  ;;  %1612 = vmatpush3.msra.mxu1 %v852_v13  ;;  %v848_v30 = vld [vmem:[%s2424_s6 + $0x58] sm:$0xff]  ;;  %v123_v33 = vld [vmem:[%s2418_s0 + $0x40] sm:$0xff]  ;;  %v847_v34 = vld [vmem:[%s2424_s6 + $0x50] sm:$0xff]  ;;  %v580_v8 = vshrl.u32 %v579_v7, 7 }
  0x55   :  { %282 = vmatprep.mubr.f32.mxu0 %v1925_v0  ;;  %1613 = vmatprep.subr.mxu1 %v851_v16  ;;  %v138_v31 = vld [vmem:[%s2419_s1 + $0x38] sm:$0xff]  ;;  %v139_v35 = vld [vmem:[%s2419_s1 + $0x40] sm:$0xff]  ;;  %v124_v37 = vld [vmem:[%s2418_s0 + $0x48] sm:$0xff] }
  0x56   :  { %1410 = vmatmul.mubr.msk.f32.gmra.mxu1 %vm367_vm1, %v117_v9  ;;  %1558 = vmatpush3.msra.mxu0 %v667_v14  ;;  %v661_v36 = vld [vmem:[%s2423_s5 + $0x40] sm:$0xff]  ;;  %v846_v38 = vld [vmem:[%s2424_s6 + $0x48] sm:$0xff]  ;;  %v660_v40 = vld [vmem:[%s2423_s5 + $0x38] sm:$0xff]  ;;  %v581_v9 = vsub.s32 0, %v580_v8  ;;  %v585_v11 = vsub.s32 1, %v580_v8 }
  0x57   :  { %498 = vmatprep.mubr.f32.mxu1 %v1925_v0  ;;  %1559 = vmatprep.subr.mxu0 %v666_v18  ;;  %v140_v39 = vld [vmem:[%s2419_s1 + $0x48] sm:$0xff]  ;;  %v125_v41 = vld [vmem:[%s2418_s0 + $0x50] sm:$0xff]  ;;  %v845_v42 = vld [vmem:[%s2424_s6 + $0x40] sm:$0xff] }
  0x58   :  { %1394 = vmatmul.mubr.msk.f32.gmra.mxu0 %vm152_vm2, %v133_v10  ;;  %1614 = vmatpush3.msra.mxu1 %v851_v16  ;;  %v141_v43 = vld [vmem:[%s2419_s1 + $0x50] sm:$0xff]  ;;  %v126_v45 = vld [vmem:[%s2418_s0 + $0x58] sm:$0xff]  ;;  %v127_v48 = vld [vmem:[%s2418_s0 + $0x60] sm:$0xff] }
  0x59   :  { %288 = vmatprep.mubr.f32.mxu0 %v1925_v0  ;;  %1615 = vmatprep.subr.mxu1 %v850_v20  ;;  %v659_v44 = vld [vmem:[%s2423_s5 + $0x30] sm:$0xff]  ;;  %v844_v46 = vld [vmem:[%s2424_s6 + $0x38] sm:$0xff]  ;;  %v143_v49 = vld [vmem:[%s2419_s1 + $0x60] sm:$0xff] }
  0x5a   :  { %1411 = vmatmul.mubr.msk.f32.gmra.mxu1 %vm367_vm1, %v118_v12  ;;  %1560 = vmatpush3.msra.mxu0 %v666_v18  ;;  %v142_v47 = vld [vmem:[%s2419_s1 + $0x58] sm:$0xff]  ;;  %v128_v50 = vld [vmem:[%s2418_s0 + $0x68] sm:$0xff]  ;;  %v129_v52 = vld [vmem:[%s2418_s0 + $0x70] sm:$0xff] }
  0x5b   :  { %504 = vmatprep.mubr.f32.mxu1 %v1925_v0  ;;  %1561 = vmatprep.subr.mxu0 %v665_v22  ;;  %v144_v51 = vld [vmem:[%s2419_s1 + $0x68] sm:$0xff]  ;;  %v145_v53 = vld [vmem:[%s2419_s1 + $0x70] sm:$0xff]  ;;  %v130_v54 = vld [vmem:[%s2418_s0 + $0x78] sm:$0xff] }
  0x5c   :  { %1395 = vmatmul.mubr.msk.f32.gmra.mxu0 %vm152_vm2, %v134_v15  ;;  %1616 = vmatpush3.msra.mxu1 %v850_v20  ;;  %v146_v55 = vld [vmem:[%s2419_s1 + $0x78] sm:$0xff]  ;;  %v658_v56 = vld [vmem:[%s2423_s5 + $0x28] sm:$0xff]  ;;  %v843_v57 = vld [vmem:[%s2424_s6 + $0x30] sm:$0xff] }
  0x5d   :  { %294 = vmatprep.mubr.f32.mxu0 %v1925_v0  ;;  %1617 = vmatprep.subr.mxu1 %v849_v24  ;;  %v657_v58 = vld [vmem:[%s2423_s5 + $0x20] sm:$0xff]  ;;  %v842_v59 = vld [vmem:[%s2424_s6 + $0x28] sm:$0xff]  ;;  %v656_v60 = vld [vmem:[%s2423_s5 + $0x18] sm:$0xff] }
  0x5e   :  { %1412 = vmatmul.mubr.msk.f32.gmra.mxu1 %vm367_vm1, %v119_v17  ;;  %1562 = vmatpush3.msra.mxu0 %v665_v22  ;;  %v841_v61 = vld [vmem:[%s2424_s6 + $0x20] sm:$0xff]  ;;  %v655_v62 = vld [vmem:[%s2423_s5 + $0x10] sm:$0xff]  ;;  %v840_v63 = vld [vmem:[%s2424_s6 + $0x18] sm:$0xff] }
  0x5f   :  { %510 = vmatprep.mubr.f32.mxu1 %v1925_v0  ;;  %1563 = vmatprep.subr.mxu0 %v664_v26  ;;  %v839_v1 = vld [vmem:[%s2424_s6 + $0x10] sm:$0xff]  ;;  %v653_v2 = vld [vmem:[%s2423_s5] sm:$0xff]  ;;  %v838_v3 = vld [vmem:[%s2424_s6 + $0x8] sm:$0xff] }
  0x60   :  { %1396 = vmatmul.mubr.msk.f32.gmra.mxu0 %vm152_vm2, %v135_v19  ;;  %1618 = vmatpush3.msra.mxu1 %v849_v24  ;;  %v837_v4 = vld [vmem:[%s2424_s6] sm:$0xff]  ;;  %v577_v10 = vld [vmem:[#allocation2] sm:$0x3] }
  0x61   :  { %300 = vmatprep.mubr.f32.mxu0 %v1925_v0  ;;  %1564 = vmatpush3.msra.mxu0 %v664_v26  ;;  %v1036_v5 = vld [vmem:[#allocation7 + $0x78] sm:$0xff]  ;;  %v2280_v13 = vrot.slane %v577_v10, %v581_v9  ;;  %v2282_v17 = vrot.slane %v577_v10, %v585_v11  ;;  %v1031_v11 = vld [vmem:[#allocation7 + $0x50] sm:$0xff] }
  0x62   :  { %1413 = vmatmul.mubr.msk.f32.gmra.mxu1 %vm367_vm1, %v120_v21  ;;  %1565 = vmatprep.subr.mxu0 %v663_v28  ;;  %v1052_v6 = vld [vmem:[#allocation9 + $0x78] sm:$0xff] }
  0x63   :  { %516 = vmatprep.mubr.f32.mxu1 %v1925_v0  ;;  %1619 = vmatprep.subr.mxu1 %v848_v30  ;;  %v1048_v7 = vld [vmem:[#allocation9 + $0x58] sm:$0xff] }
  0x64   :  { %1397 = vmatmul.mubr.msk.f32.gmra.mxu0 %vm152_vm2, %v136_v23  ;;  %1620 = vmatpush3.msra.mxu1 %v848_v30 }
  0x65   :  { %306 = vmatprep.mubr.f32.mxu0 %v1925_v0  ;;  %1566 = vmatpush3.msra.mxu0 %v663_v28 }
  0x66   :  { %1414 = vmatmul.mubr.msk.f32.gmra.mxu1 %vm367_vm1, %v121_v25  ;;  %1567 = vmatprep.subr.mxu0 %v662_v32 }
  0x67   :  { %522 = vmatprep.mubr.f32.mxu1 %v1925_v0  ;;  %1621 = vmatprep.subr.mxu1 %v847_v34 }
  0x68   :  { %1398 = vmatmul.mubr.msk.f32.gmra.mxu0 %vm152_vm2, %v137_v27  ;;  %1622 = vmatpush3.msra.mxu1 %v847_v34 }
  0x69   :  { %312 = vmatprep.mubr.f32.mxu0 %v1925_v0  ;;  %1568 = vmatpush3.msra.mxu0 %v662_v32 }
  0x6a   :  { %1415 = vmatmul.mubr.msk.f32.gmra.mxu1 %vm367_vm1, %v122_v29  ;;  %1569 = vmatprep.subr.mxu0 %v661_v36 }
  0x6b   :  { %528 = vmatprep.mubr.f32.mxu1 %v1925_v0  ;;  %1623 = vmatprep.subr.mxu1 %v846_v38 }
  0x6c   :  { %1399 = vmatmul.mubr.msk.f32.gmra.mxu0 %vm152_vm2, %v138_v31  ;;  %1624 = vmatpush3.msra.mxu1 %v846_v38 }
  0x6d   :  { %318 = vmatprep.mubr.f32.mxu0 %v1925_v0  ;;  %1570 = vmatpush3.msra.mxu0 %v661_v36 }
  0x6e   :  { %1416 = vmatmul.mubr.msk.f32.gmra.mxu1 %vm367_vm1, %v123_v33  ;;  %1571 = vmatprep.subr.mxu0 %v660_v40 }
  0x6f   :  { %534 = vmatprep.mubr.f32.mxu1 %v1925_v0  ;;  %1625 = vmatprep.subr.mxu1 %v845_v42 }
  0x70   :  { %1400 = vmatmul.mubr.msk.f32.gmra.mxu0 %vm152_vm2, %v139_v35  ;;  %1626 = vmatpush3.msra.mxu1 %v845_v42 }
  0x71   :  { %324 = vmatprep.mubr.f32.mxu0 %v1925_v0  ;;  %1572 = vmatpush3.msra.mxu0 %v660_v40 }
  0x72   :  { %1417 = vmatmul.mubr.msk.f32.gmra.mxu1 %vm367_vm1, %v124_v37  ;;  %1573 = vmatprep.subr.mxu0 %v659_v44 }
  0x73   :  { %540 = vmatprep.mubr.f32.mxu1 %v1925_v0  ;;  %1627 = vmatprep.subr.mxu1 %v844_v46 }
  0x74   :  { %1401 = vmatmul.mubr.msk.f32.gmra.mxu0 %vm152_vm2, %v140_v39  ;;  %1628 = vmatpush3.msra.mxu1 %v844_v46  ;;  %v1051_v39 = vld [vmem:[#allocation9 + $0x70] sm:$0xff] }
  0x75   :  { %330 = vmatprep.mubr.f32.mxu0 %v1925_v0  ;;  %1574 = vmatpush3.msra.mxu0 %v659_v44 }
  0x76   :  { %1418 = vmatmul.mubr.msk.f32.gmra.mxu1 %vm367_vm1, %v125_v41  ;;  %1575 = vmatprep.subr.mxu0 %v658_v56 }
  0x77   :  { %546 = vmatprep.mubr.f32.mxu1 %v1925_v0  ;;  %1629 = vmatprep.subr.mxu1 %v843_v57 }
  0x78   :  { %1402 = vmatmul.mubr.msk.f32.gmra.mxu0 %vm152_vm2, %v141_v43  ;;  %1630 = vmatpush3.msra.mxu1 %v843_v57 }
  0x79   :  { %336 = vmatprep.mubr.f32.mxu0 %v1925_v0  ;;  %1576 = vmatpush3.msra.mxu0 %v658_v56 }
  0x7a   :  { %1419 = vmatmul.mubr.msk.f32.gmra.mxu1 %vm367_vm1, %v126_v45  ;;  %1577 = vmatprep.subr.mxu0 %v657_v58  ;;  %v1035_v45 = vld [vmem:[#allocation7 + $0x70] sm:$0xff] }
  0x7b   :  { %552 = vmatprep.mubr.f32.mxu1 %v1925_v0  ;;  %1631 = vmatprep.subr.mxu1 %v842_v59 }
  0x7c   :  { %1403 = vmatmul.mubr.msk.f32.gmra.mxu0 %vm152_vm2, %v142_v47  ;;  %1632 = vmatpush3.msra.mxu1 %v842_v59 }
  0x7d   :  { %342 = vmatprep.mubr.f32.mxu0 %v1925_v0  ;;  %1578 = vmatpush3.msra.mxu0 %v657_v58  ;;  %v1033_v58 = vld [vmem:[#allocation7 + $0x60] sm:$0xff] }
  0x7e   :  { %1420 = vmatmul.mubr.msk.f32.gmra.mxu1 %vm367_vm1, %v127_v48  ;;  %1579 = vmatprep.subr.mxu0 %v656_v60 }
  0x7f   :  { %558 = vmatprep.mubr.f32.mxu1 %v1925_v0  ;;  %1633 = vmatprep.subr.mxu1 %v841_v61 }
  0x80   :  { %1404 = vmatmul.mubr.msk.f32.gmra.mxu0 %vm152_vm2, %v143_v49  ;;  %1634 = vmatpush3.msra.mxu1 %v841_v61  ;;  %v1050_v49 = vld [vmem:[#allocation9 + $0x68] sm:$0xff] }
  0x81   :  { %348 = vmatprep.mubr.f32.mxu0 %v1925_v0  ;;  %1580 = vmatpush3.msra.mxu0 %v656_v60 }
  0x82   :  { %1421 = vmatmul.mubr.msk.f32.gmra.mxu1 %vm367_vm1, %v128_v50  ;;  %1581 = vmatprep.subr.mxu0 %v655_v62 }
  0x83   :  { %564 = vmatprep.mubr.f32.mxu1 %v1925_v0  ;;  %1635 = vmatprep.subr.mxu1 %v840_v63 }
  0x84   :  { %1405 = vmatmul.mubr.msk.f32.gmra.mxu0 %vm152_vm2, %v144_v51  ;;  %1636 = vmatpush3.msra.mxu1 %v840_v63 }
  0x85   :  { %354 = vmatprep.mubr.f32.mxu0 %v1925_v0  ;;  %1582 = vmatpush3.msra.mxu0 %v655_v62  ;;  %v1049_v62 = vld [vmem:[#allocation9 + $0x60] sm:$0xff] }
  0x86   :  { %1422 = vmatmul.mubr.msk.f32.gmra.mxu1 %vm367_vm1, %v129_v52  ;;  %1637 = vmatprep.subr.mxu1 %v839_v1  ;;  %v1034_v52 = vld [vmem:[#allocation7 + $0x68] sm:$0xff] }
  0x87   :  { %570 = vmatprep.mubr.f32.mxu1 %v1925_v0  ;;  %1638 = vmatpush3.msra.mxu1 %v839_v1  ;;  %v1032_v1 = vld [vmem:[#allocation7 + $0x58] sm:$0xff] }
  0x88   :  { %1406 = vmatmul.mubr.msk.f32.gmra.mxu0 %vm152_vm2, %v145_v53  ;;  %1639 = vmatprep.subr.mxu1 %v838_v3 }
  0x89   :  { %360 = vmatprep.mubr.f32.mxu0 %v1925_v0  ;;  %v654_v0 = vld [vmem:[%s2423_s5 + $0x8] sm:$0xff]  ;;  %1640 = vmatpush3.msra.mxu1 %v838_v3 }
  0x8a   :  { %1423 = vmatmul.mubr.msk.f32.gmra.mxu1 %vm367_vm1, %v130_v54  ;;  %1583 = vmatprep.subr.mxu0 %v654_v0 }
  0x8b   :  { %1584 = vmatpush3.msra.mxu0 %v654_v0  ;;  %1641 = vmatprep.subr.mxu1 %v837_v4 }
  0x8c   :  { %1407 = vmatmul.mubr.msk.f32.gmra.mxu0 %vm152_vm2, %v146_v55  ;;  %1585 = vmatprep.subr.mxu0 %v653_v2 }
  0x8d   :  { %1586 = vmatpush3.msra.mxu0 %v653_v2  ;;  %1642 = vmatpush3.msra.mxu1 %v837_v4 }
  0x8e   :  { %1723 = vmatprep.subr.mxu1 %v1036_v5  ;;  %1667 = vmatprep.subr.mxu0 %v1052_v6 }
 0x10e   :  { %v482_v12 = vpop.f32.mrf.mxu1 }
 0x110   :  { %v272_v14 = vpop.f32.mrf.mxu0  ;;  %v484_v15 = vpop.f32.mrf.mxu1 }
 0x111   :  { %v483_v16 = vadd.f32 %v482_v12, %v272_v14 }
 0x112   :  { %v274_v18 = vpop.f32.mrf.mxu0  ;;  %v488_v19 = vpop.f32.mrf.mxu1 }
 0x113   :  { %v589_v20 = vadd.f32 %v2280_v13, %v483_v16  ;;  %v485_v21 = vadd.f32 %v484_v15, %v274_v18 }
 0x114   :  { %v278_v22 = vpop.f32.mrf.mxu0  ;;  %v490_v23 = vpop.f32.mrf.mxu1 }
 0x115   :  { %v621_v24 = vmax.f32 %v589_v20, 0.0  ;;  %v590_v25 = vadd.f32 %v2282_v17, %v485_v21  ;;  %v489_v26 = vadd.f32 %v488_v19, %v278_v22  ;;  %v1047_v19 = vld [vmem:[#allocation9 + $0x50] sm:$0xff]  ;;  %v1030_v20 = vld [vmem:[#allocation7 + $0x48] sm:$0xff] }
 0x116   :  { %v280_v27 = vpop.f32.mrf.mxu0  ;;  %v494_v28 = vpop.f32.mrf.mxu1 }
 0x117   :  { %v622_v29 = vmax.f32 %v590_v25, 0.0  ;;  %v591_v30 = vadd.f32 %v2280_v13, %v489_v26  ;;  %v491_v31 = vadd.f32 %v490_v23, %v280_v27  ;;  %1587 = vmatprep.mubr.f32.mxu0 %v621_v24  ;;  %v1029_v26 = vld [vmem:[#allocation7 + $0x40] sm:$0xff] }
 0x118   :  { %v284_v32 = vpop.f32.mrf.mxu0  ;;  %v496_v33 = vpop.f32.mrf.mxu1 }
 0x119   :  { %v623_v34 = vmax.f32 %v591_v30, 0.0  ;;  %v592_v35 = vadd.f32 %v2282_v17, %v491_v31  ;;  %v495_v36 = vadd.f32 %v494_v28, %v284_v32  ;;  %1643 = vmatprep.mubr.f32.mxu1 %v622_v29  ;;  %v1046_v29 = vld [vmem:[#allocation9 + $0x48] sm:$0xff] }
 0x11a   :  { %v286_v37 = vpop.f32.mrf.mxu0  ;;  %v500_v38 = vpop.f32.mrf.mxu1 }
 0x11b   :  { %v624_v40 = vmax.f32 %v592_v35, 0.0  ;;  %v593_v41 = vadd.f32 %v2280_v13, %v495_v36  ;;  %v497_v42 = vadd.f32 %v496_v33, %v286_v37  ;;  %1588 = vmatmul.mubr.f32.vlgmr.msra.gmra.mxu0 %v623_v34  ;;  %v1045_v35 = vld [vmem:[#allocation9 + $0x40] sm:$0xff] }
 0x11c   :  { %v290_v43 = vpop.f32.mrf.mxu0  ;;  %v502_v44 = vpop.f32.mrf.mxu1  ;;  %1668 = vmatpush3.msra.mxu0 %v1052_v6 }
 0x11d   :  { %v625_v46 = vmax.f32 %v593_v41, 0.0  ;;  %v594_v47 = vadd.f32 %v2282_v17, %v497_v42  ;;  %v501_v48 = vadd.f32 %v500_v38, %v290_v43  ;;  %1644 = vmatmul.mubr.f32.vlgmr.msra.gmra.mxu1 %v624_v40  ;;  %1669 = vmatprep.subr.mxu0 %v1051_v39 }
 0x11e   :  { %v292_v50 = vpop.f32.mrf.mxu0  ;;  %v506_v51 = vpop.f32.mrf.mxu1  ;;  %1724 = vmatpush3.msra.mxu1 %v1036_v5  ;;  %1670 = vmatpush3.msra.mxu0 %v1051_v39  ;;  %v1028_v39 = vld [vmem:[#allocation7 + $0x38] sm:$0xff] }
 0x11f   :  { %v626_v53 = vmax.f32 %v594_v47, 0.0  ;;  %v595_v54 = vadd.f32 %v2280_v13, %v501_v48  ;;  %v503_v55 = vadd.f32 %v502_v44, %v292_v50  ;;  %1590 = vmatprep.mubr.f32.mxu0 %v625_v46  ;;  %1725 = vmatprep.subr.mxu1 %v1035_v45  ;;  %v1027_v46 = vld [vmem:[#allocation7 + $0x30] sm:$0xff] }
 0x120   :  { %v296_v56 = vpop.f32.mrf.mxu0  ;;  %v508_v57 = vpop.f32.mrf.mxu1  ;;  %1726 = vmatpush3.msra.mxu1 %v1035_v45  ;;  %1671 = vmatprep.subr.mxu0 %v1050_v49  ;;  %v1044_v45 = vld [vmem:[#allocation9 + $0x38] sm:$0xff] }
 0x121   :  { %v627_v59 = vmax.f32 %v595_v54, 0.0  ;;  %v596_v60 = vadd.f32 %v2282_v17, %v503_v55  ;;  %v507_v61 = vadd.f32 %v506_v51, %v296_v56  ;;  %1646 = vmatprep.mubr.f32.mxu1 %v626_v53  ;;  %1727 = vmatprep.subr.mxu1 %v1034_v52  ;;  %v1043_v55 = vld [vmem:[#allocation9 + $0x30] sm:$0xff] }
 0x122   :  { %v298_v63 = vpop.f32.mrf.mxu0  ;;  %v512_v0 = vpop.f32.mrf.mxu1  ;;  %1728 = vmatpush3.msra.mxu1 %v1034_v52  ;;  %1672 = vmatpush3.msra.mxu0 %v1050_v49  ;;  %v1026_v52 = vld [vmem:[#allocation7 + $0x28] sm:$0xff] }
 0x123   :  { %v628_v2 = vmax.f32 %v596_v60, 0.0  ;;  %v597_v3 = vadd.f32 %v2280_v13, %v507_v61  ;;  %v509_v4 = vadd.f32 %v508_v57, %v298_v63  ;;  %1591 = vmatmul.mubr.f32.gmra.mxu0 %v627_v59  ;;  %1729 = vmatprep.subr.mxu1 %v1033_v58  ;;  %v1042_v61 = vld [vmem:[#allocation9 + $0x28] sm:$0xff] }
 0x124   :  { %v302_v5 = vpop.f32.mrf.mxu0  ;;  %v514_v6 = vpop.f32.mrf.mxu1  ;;  %1730 = vmatpush3.msra.mxu1 %v1033_v58  ;;  %1673 = vmatprep.subr.mxu0 %v1049_v62 }
 0x125   :  { %v629_v8 = vmax.f32 %v597_v3, 0.0  ;;  %v598_v9 = vadd.f32 %v2282_v17, %v509_v4  ;;  %v513_v10 = vadd.f32 %v512_v0, %v302_v5  ;;  %1647 = vmatmul.mubr.f32.gmra.mxu1 %v628_v2  ;;  %1731 = vmatprep.subr.mxu1 %v1032_v1 }
 0x126   :  { %v304_v12 = vpop.f32.mrf.mxu0  ;;  %v518_v14 = vpop.f32.mrf.mxu1  ;;  %1674 = vmatpush3.msra.mxu0 %v1049_v62  ;;  %1732 = vmatpush3.msra.mxu1 %v1032_v1  ;;  %v1025_v1 = vld [vmem:[#allocation7 + $0x20] sm:$0xff] }
 0x127   :  { %v630_v15 = vmax.f32 %v598_v9, 0.0  ;;  %v599_v16 = vadd.f32 %v2280_v13, %v513_v10  ;;  %v515_v18 = vadd.f32 %v514_v6, %v304_v12  ;;  %1593 = vmatprep.mubr.f32.mxu0 %v629_v8  ;;  %1675 = vmatprep.subr.mxu0 %v1048_v7 }
 0x128   :  { %v308_v21 = vpop.f32.mrf.mxu0  ;;  %v520_v22 = vpop.f32.mrf.mxu1  ;;  %1733 = vmatprep.subr.mxu1 %v1031_v11  ;;  %1676 = vmatpush3.msra.mxu0 %v1048_v7 }
 0x129   :  { %v631_v23 = vmax.f32 %v599_v16, 0.0  ;;  %v600_v24 = vadd.f32 %v2282_v17, %v515_v18  ;;  %v519_v25 = vadd.f32 %v518_v14, %v308_v21  ;;  %1649 = vmatprep.mubr.f32.mxu1 %v630_v15  ;;  %1734 = vmatpush3.msra.mxu1 %v1031_v11 }
 0x12a   :  { %v310_v27 = vpop.f32.mrf.mxu0  ;;  %v524_v28 = vpop.f32.mrf.mxu1  ;;  %1677 = vmatprep.subr.mxu0 %v1047_v19  ;;  %1735 = vmatprep.subr.mxu1 %v1030_v20 }
 0x12b   :  { %v632_v30 = vmax.f32 %v600_v24, 0.0  ;;  %v601_v31 = vadd.f32 %v2280_v13, %v519_v25  ;;  %v521_v32 = vadd.f32 %v520_v22, %v310_v27  ;;  %1594 = vmatmul.mubr.f32.gmra.mxu0 %v631_v23  ;;  %1736 = vmatpush3.msra.mxu1 %v1030_v20 }
 0x12c   :  { %v314_v33 = vpop.f32.mrf.mxu0  ;;  %v526_v34 = vpop.f32.mrf.mxu1  ;;  %1678 = vmatpush3.msra.mxu0 %v1047_v19  ;;  %1737 = vmatprep.subr.mxu1 %v1029_v26 }
 0x12d   :  { %v633_v36 = vmax.f32 %v601_v31, 0.0  ;;  %v602_v37 = vadd.f32 %v2282_v17, %v521_v32  ;;  %v525_v38 = vadd.f32 %v524_v28, %v314_v33  ;;  %1650 = vmatmul.mubr.f32.gmra.mxu1 %v632_v30  ;;  %1679 = vmatprep.subr.mxu0 %v1046_v29 }
 0x12e   :  { %v316_v40 = vpop.f32.mrf.mxu0  ;;  %v530_v41 = vpop.f32.mrf.mxu1  ;;  %1680 = vmatpush3.msra.mxu0 %v1046_v29  ;;  %1738 = vmatpush3.msra.mxu1 %v1029_v26 }
 0x12f   :  { %v634_v42 = vmax.f32 %v602_v37, 0.0  ;;  %v603_v43 = vadd.f32 %v2280_v13, %v525_v38  ;;  %v527_v44 = vadd.f32 %v526_v34, %v316_v40  ;;  %1596 = vmatprep.mubr.f32.mxu0 %v633_v36  ;;  %1681 = vmatprep.subr.mxu0 %v1045_v35 }
 0x130   :  { %v320_v47 = vpop.f32.mrf.mxu0  ;;  %v532_v48 = vpop.f32.mrf.mxu1  ;;  %1739 = vmatprep.subr.mxu1 %v1028_v39  ;;  %1682 = vmatpush3.msra.mxu0 %v1045_v35 }
 0x131   :  { %v635_v49 = vmax.f32 %v603_v43, 0.0  ;;  %v604_v50 = vadd.f32 %v2282_v17, %v527_v44  ;;  %v531_v51 = vadd.f32 %v530_v41, %v320_v47  ;;  %1652 = vmatprep.mubr.f32.mxu1 %v634_v42  ;;  %1740 = vmatpush3.msra.mxu1 %v1028_v39 }
 0x132   :  { %v322_v53 = vpop.f32.mrf.mxu0  ;;  %v536_v54 = vpop.f32.mrf.mxu1  ;;  %1683 = vmatprep.subr.mxu0 %v1044_v45  ;;  %1741 = vmatprep.subr.mxu1 %v1027_v46 }
 0x133   :  { %v636_v56 = vmax.f32 %v604_v50, 0.0  ;;  %v605_v57 = vadd.f32 %v2280_v13, %v531_v51  ;;  %v533_v58 = vadd.f32 %v532_v48, %v322_v53  ;;  %1597 = vmatmul.mubr.f32.gmra.mxu0 %v635_v49  ;;  %1742 = vmatpush3.msra.mxu1 %v1027_v46 }
 0x134   :  { %v326_v59 = vpop.f32.mrf.mxu0  ;;  %v538_v60 = vpop.f32.mrf.mxu1  ;;  %1684 = vmatpush3.msra.mxu0 %v1044_v45  ;;  %1743 = vmatprep.subr.mxu1 %v1026_v52 }
 0x135   :  { %v637_v62 = vmax.f32 %v605_v57, 0.0  ;;  %v606_v63 = vadd.f32 %v2282_v17, %v533_v58  ;;  %v537_v0 = vadd.f32 %v536_v54, %v326_v59  ;;  %1653 = vmatmul.mubr.f32.gmra.mxu1 %v636_v56  ;;  %1685 = vmatprep.subr.mxu0 %v1043_v55 }
 0x136   :  { %v328_v2 = vpop.f32.mrf.mxu0  ;;  %v542_v3 = vpop.f32.mrf.mxu1  ;;  %1686 = vmatpush3.msra.mxu0 %v1043_v55  ;;  %1744 = vmatpush3.msra.mxu1 %v1026_v52 }
 0x137   :  { %v638_v4 = vmax.f32 %v606_v63, 0.0  ;;  %v607_v5 = vadd.f32 %v2280_v13, %v537_v0  ;;  %v539_v6 = vadd.f32 %v538_v60, %v328_v2  ;;  %1599 = vmatprep.mubr.f32.mxu0 %v637_v62  ;;  %1687 = vmatprep.subr.mxu0 %v1042_v61 }
 0x138   :  { %v332_v7 = vpop.f32.mrf.mxu0  ;;  %v544_v8 = vpop.f32.mrf.mxu1  ;;  %1745 = vmatprep.subr.mxu1 %v1025_v1  ;;  %1688 = vmatpush3.msra.mxu0 %v1042_v61 }
 0x139   :  { %v639_v9 = vmax.f32 %v607_v5, 0.0  ;;  %v608_v10 = vadd.f32 %v2282_v17, %v539_v6  ;;  %v543_v11 = vadd.f32 %v542_v3, %v332_v7  ;;  %1655 = vmatprep.mubr.f32.mxu1 %v638_v4  ;;  %1746 = vmatpush3.msra.mxu1 %v1025_v1  ;;  %v1041_v7 = vld [vmem:[#allocation9 + $0x20] sm:$0xff] }
 0x13a   :  { %v334_v12 = vpop.f32.mrf.mxu0  ;;  %v548_v14 = vpop.f32.mrf.mxu1  ;;  %1689 = vmatprep.subr.mxu0 %v1041_v7 }
 0x13b   :  { %v640_v15 = vmax.f32 %v608_v10, 0.0  ;;  %v609_v16 = vadd.f32 %v2280_v13, %v543_v11  ;;  %v545_v18 = vadd.f32 %v544_v8, %v334_v12  ;;  %1600 = vmatmul.mubr.f32.gmra.mxu0 %v639_v9  ;;  %v1024_v8 = vld [vmem:[#allocation7 + $0x18] sm:$0xff]  ;;  %v1023_v10 = vld [vmem:[#allocation7 + $0x10] sm:$0xff]  ;;  %v1022_v11 = vld [vmem:[#allocation7 + $0x8] sm:$0xff] }
 0x13c   :  { %v338_v19 = vpop.f32.mrf.mxu0  ;;  %v550_v20 = vpop.f32.mrf.mxu1  ;;  %1747 = vmatprep.subr.mxu1 %v1024_v8  ;;  %1690 = vmatpush3.msra.mxu0 %v1041_v7  ;;  %v1040_v9 = vld [vmem:[#allocation9 + $0x18] sm:$0xff]  ;;  %v1021_v12 = vld [vmem:[#allocation7] sm:$0xff] }
 0x13d   :  { %v641_v21 = vmax.f32 %v609_v16, 0.0  ;;  %v610_v22 = vadd.f32 %v2282_v17, %v545_v18  ;;  %v549_v23 = vadd.f32 %v548_v14, %v338_v19  ;;  %1656 = vmatmul.mubr.f32.gmra.mxu1 %v640_v15  ;;  %1691 = vmatprep.subr.mxu0 %v1040_v9  ;;  %v1037_v14 = vld [vmem:[#allocation9] sm:$0xff]  ;;  %v2316_v15 = vld [vmem:[#allocation4] ss:$0 sm:$0xff]  ;;  %v2318_v18 = vld [vmem:[#allocation6] ss:$0 sm:$0xff] }
 0x13e   :  { %v340_v24 = vpop.f32.mrf.mxu0  ;;  %v554_v25 = vpop.f32.mrf.mxu1  ;;  %1748 = vmatpush3.msra.mxu1 %v1024_v8  ;;  %1692 = vmatpush3.msra.mxu0 %v1040_v9 }
 0x13f   :  { %v642_v26 = vmax.f32 %v610_v22, 0.0  ;;  %v611_v27 = vadd.f32 %v2280_v13, %v549_v23  ;;  %v551_v28 = vadd.f32 %v550_v20, %v340_v24  ;;  %1602 = vmatprep.mubr.f32.mxu0 %v641_v21  ;;  %1749 = vmatprep.subr.mxu1 %v1023_v10 }
 0x140   :  { %v344_v29 = vpop.f32.mrf.mxu0  ;;  %v556_v30 = vpop.f32.mrf.mxu1  ;;  %1750 = vmatpush3.msra.mxu1 %v1023_v10 }
 0x141   :  { %v643_v31 = vmax.f32 %v611_v27, 0.0  ;;  %v612_v32 = vadd.f32 %v2282_v17, %v551_v28  ;;  %v555_v33 = vadd.f32 %v554_v25, %v344_v29  ;;  %1658 = vmatprep.mubr.f32.mxu1 %v642_v26  ;;  %1751 = vmatprep.subr.mxu1 %v1022_v11 }
 0x142   :  { %v346_v34 = vpop.f32.mrf.mxu0  ;;  %v560_v35 = vpop.f32.mrf.mxu1  ;;  %1752 = vmatpush3.msra.mxu1 %v1022_v11 }
 0x143   :  { %v644_v36 = vmax.f32 %v612_v32, 0.0  ;;  %v613_v37 = vadd.f32 %v2280_v13, %v555_v33  ;;  %v557_v38 = vadd.f32 %v556_v30, %v346_v34  ;;  %1603 = vmatmul.mubr.f32.gmra.mxu0 %v643_v31  ;;  %1753 = vmatprep.subr.mxu1 %v1021_v12 }
 0x144   :  { %v350_v39 = vpop.f32.mrf.mxu0  ;;  %v562_v40 = vpop.f32.mrf.mxu1  ;;  %1754 = vmatpush3.msra.mxu1 %v1021_v12 }
 0x145   :  { %v645_v41 = vmax.f32 %v613_v37, 0.0  ;;  %v614_v42 = vadd.f32 %v2282_v17, %v557_v38  ;;  %v561_v43 = vadd.f32 %v560_v35, %v350_v39  ;;  %1659 = vmatmul.mubr.f32.gmra.mxu1 %v644_v36 }
 0x146   :  { %v352_v44 = vpop.f32.mrf.mxu0  ;;  %v566_v45 = vpop.f32.mrf.mxu1 }
 0x147   :  { %v646_v46 = vmax.f32 %v614_v42, 0.0  ;;  %v615_v47 = vadd.f32 %v2280_v13, %v561_v43  ;;  %v563_v48 = vadd.f32 %v562_v40, %v352_v44  ;;  %1605 = vmatprep.mubr.f32.mxu0 %v645_v41 }
 0x148   :  { %v356_v49 = vpop.f32.mrf.mxu0  ;;  %v568_v50 = vpop.f32.mrf.mxu1 }
 0x149   :  { %v647_v51 = vmax.f32 %v615_v47, 0.0  ;;  %v616_v52 = vadd.f32 %v2282_v17, %v563_v48  ;;  %v567_v53 = vadd.f32 %v566_v45, %v356_v49  ;;  %1661 = vmatprep.mubr.f32.mxu1 %v646_v46 }
 0x14a   :  { %v358_v54 = vpop.f32.mrf.mxu0  ;;  %v572_v55 = vpop.f32.mrf.mxu1 }
 0x14b   :  { %v648_v56 = vmax.f32 %v616_v52, 0.0  ;;  %v617_v57 = vadd.f32 %v2280_v13, %v567_v53  ;;  %v569_v58 = vadd.f32 %v568_v50, %v358_v54  ;;  %1606 = vmatmul.mubr.f32.gmra.mxu0 %v647_v51 }
 0x14c   :  { %v362_v59 = vpop.f32.mrf.mxu0  ;;  %v574_v63 = vpop.f32.mrf.mxu1 }
 0x14d   :  { %v649_v60 = vmax.f32 %v617_v57, 0.0  ;;  %v618_v61 = vadd.f32 %v2282_v17, %v569_v58  ;;  %v573_v62 = vadd.f32 %v572_v55, %v362_v59  ;;  %1662 = vmatmul.mubr.f32.gmra.mxu1 %v648_v56 }
 0x14e   :  { %v364_v0 = vpop.f32.mrf.mxu0 }
 0x14f   :  { %v650_v1 = vmax.f32 %v618_v61, 0.0  ;;  %v619_v2 = vadd.f32 %v2280_v13, %v573_v62  ;;  %v575_v3 = vadd.f32 %v574_v63, %v364_v0  ;;  %1608 = vmatprep.mubr.f32.mxu0 %v649_v60  ;;  %v1039_v13 = vld [vmem:[#allocation9 + $0x10] sm:$0xff] }
 0x150   :  { %1693 = vmatprep.subr.mxu0 %v1039_v13 }
 0x151   :  { %v651_v4 = vmax.f32 %v619_v2, 0.0  ;;  %v620_v5 = vadd.f32 %v2282_v17, %v575_v3  ;;  %1664 = vmatprep.mubr.f32.mxu1 %v650_v1  ;;  %1694 = vmatpush3.msra.mxu0 %v1039_v13  ;;  %v1038_v17 = vld [vmem:[#allocation9 + $0x8] sm:$0xff] }
 0x152   :  { %1695 = vmatprep.subr.mxu0 %v1038_v17 }
 0x153   :  { %v652_v6 = vmax.f32 %v620_v5, 0.0  ;;  %1609 = vmatmul.mubr.f32.gmra.mxu0 %v651_v4 }
 0x154   :  { %1696 = vmatpush3.msra.mxu0 %v1038_v17 }
 0x155   :  { %1665 = vmatmul.mubr.f32.gmra.mxu1 %v652_v6  ;;  %1697 = vmatprep.subr.mxu0 %v1037_v14 }
 0x156   :  { %1698 = vmatpush3.msra.mxu0 %v1037_v14 }
 0x1db   :  { %v1589_v16 = vpop.f32.mrf.mxu0 }
 0x1dc   :  { %v748_v19 = vadd.f32 %v1589_v16, %v2316_v15 }
 0x1dd   :  { %v742_v20 = vpop.f32.mrf.mxu0  ;;  %v1645_v21 = vpop.f32.mrf.mxu1 }
 0x1de   :  { %v743_v22 = vadd.f32 %v2316_v15, %v742_v20  ;;  %v932_v23 = vadd.f32 %v1645_v21, %v2318_v18  ;;  %v822_v27 = vmax.f32 %v748_v19, 0.0 }
 0x1df   :  { %v926_v24 = vpop.f32.mrf.mxu1 }
 0x1e0   :  { %v821_v25 = vmax.f32 %v743_v22, 0.0  ;;  %v927_v26 = vadd.f32 %v2318_v18, %v926_v24  ;;  %v1006_v29 = vmax.f32 %v932_v23, 0.0 }
 0x1e2   :  { %v1005_v28 = vmax.f32 %v927_v26, 0.0  ;;  %1755 = vmatprep.mubr.f32.mxu1 %v821_v25 }
 0x1e3   :  { %v1592_v30 = vpop.f32.mrf.mxu0  ;;  %1756 = vmatmul.mubr.f32.vlgmr.msra.gmra.mxu1 %v822_v27 }
 0x1e4   :  { %1699 = vmatprep.mubr.f32.mxu0 %v1005_v28  ;;  %v758_v31 = vadd.f32 %v1592_v30, %v2316_v15 }
 0x1e5   :  { %v752_v32 = vpop.f32.mrf.mxu0  ;;  %v1648_v33 = vpop.f32.mrf.mxu1  ;;  %1700 = vmatmul.mubr.f32.vlgmr.msra.gmra.mxu0 %v1006_v29 }
 0x1e6   :  { %v753_v34 = vadd.f32 %v2316_v15, %v752_v32  ;;  %v942_v35 = vadd.f32 %v1648_v33, %v2318_v18  ;;  %v824_v39 = vmax.f32 %v758_v31, 0.0 }
 0x1e7   :  { %v936_v36 = vpop.f32.mrf.mxu1 }
 0x1e8   :  { %v823_v37 = vmax.f32 %v753_v34, 0.0  ;;  %v937_v38 = vadd.f32 %v2318_v18, %v936_v36  ;;  %v1008_v41 = vmax.f32 %v942_v35, 0.0 }
 0x1ea   :  { %v1007_v40 = vmax.f32 %v937_v38, 0.0  ;;  %1758 = vmatprep.mubr.f32.mxu1 %v823_v37 }
 0x1eb   :  { %v1595_v42 = vpop.f32.mrf.mxu0  ;;  %1759 = vmatmul.mubr.f32.gmra.mxu1 %v824_v39 }
 0x1ec   :  { %1702 = vmatprep.mubr.f32.mxu0 %v1007_v40  ;;  %v768_v43 = vadd.f32 %v1595_v42, %v2316_v15 }
 0x1ed   :  { %v762_v44 = vpop.f32.mrf.mxu0  ;;  %v1651_v45 = vpop.f32.mrf.mxu1  ;;  %1703 = vmatmul.mubr.f32.gmra.mxu0 %v1008_v41 }
 0x1ee   :  { %v763_v46 = vadd.f32 %v2316_v15, %v762_v44  ;;  %v952_v47 = vadd.f32 %v1651_v45, %v2318_v18  ;;  %v826_v51 = vmax.f32 %v768_v43, 0.0 }
 0x1ef   :  { %v946_v48 = vpop.f32.mrf.mxu1 }
 0x1f0   :  { %v825_v49 = vmax.f32 %v763_v46, 0.0  ;;  %v947_v50 = vadd.f32 %v2318_v18, %v946_v48  ;;  %v1010_v53 = vmax.f32 %v952_v47, 0.0 }
 0x1f2   :  { %v1009_v52 = vmax.f32 %v947_v50, 0.0  ;;  %1761 = vmatprep.mubr.f32.mxu1 %v825_v49 }
 0x1f3   :  { %v1598_v54 = vpop.f32.mrf.mxu0  ;;  %1762 = vmatmul.mubr.f32.gmra.mxu1 %v826_v51 }
 0x1f4   :  { %1705 = vmatprep.mubr.f32.mxu0 %v1009_v52  ;;  %v778_v55 = vadd.f32 %v1598_v54, %v2316_v15  ;;  %v2352_v54 = vld [vmem:[#allocation10] ss:$0 sm:$0xff] }
 0x1f5   :  { %v772_v56 = vpop.f32.mrf.mxu0  ;;  %v1654_v57 = vpop.f32.mrf.mxu1  ;;  %1706 = vmatmul.mubr.f32.gmra.mxu0 %v1010_v53 }
 0x1f6   :  { %v773_v58 = vadd.f32 %v2316_v15, %v772_v56  ;;  %v962_v59 = vadd.f32 %v1654_v57, %v2318_v18  ;;  %v828_v63 = vmax.f32 %v778_v55, 0.0 }
 0x1f7   :  { %v956_v60 = vpop.f32.mrf.mxu1 }
 0x1f8   :  { %v827_v61 = vmax.f32 %v773_v58, 0.0  ;;  %v957_v62 = vadd.f32 %v2318_v18, %v956_v60  ;;  %v1012_v1 = vmax.f32 %v962_v59, 0.0 }
 0x1fa   :  { %v1011_v0 = vmax.f32 %v957_v62, 0.0  ;;  %1764 = vmatprep.mubr.f32.mxu1 %v827_v61 }
 0x1fb   :  { %v1601_v2 = vpop.f32.mrf.mxu0  ;;  %1765 = vmatmul.mubr.f32.gmra.mxu1 %v828_v63 }
 0x1fc   :  { %1708 = vmatprep.mubr.f32.mxu0 %v1011_v0  ;;  %v788_v3 = vadd.f32 %v1601_v2, %v2316_v15 }
 0x1fd   :  { %v782_v4 = vpop.f32.mrf.mxu0  ;;  %v1657_v5 = vpop.f32.mrf.mxu1  ;;  %1709 = vmatmul.mubr.f32.gmra.mxu0 %v1012_v1 }
 0x1fe   :  { %v783_v6 = vadd.f32 %v2316_v15, %v782_v4  ;;  %v972_v7 = vadd.f32 %v1657_v5, %v2318_v18  ;;  %v830_v13 = vmax.f32 %v788_v3, 0.0 }
 0x1ff   :  { %v966_v8 = vpop.f32.mrf.mxu1 }
 0x200   :  { %v829_v9 = vmax.f32 %v783_v6, 0.0  ;;  %v967_v10 = vadd.f32 %v2318_v18, %v966_v8  ;;  %v1014_v17 = vmax.f32 %v972_v7, 0.0 }
 0x202   :  { %v1013_v11 = vmax.f32 %v967_v10, 0.0  ;;  %1767 = vmatprep.mubr.f32.mxu1 %v829_v9 }
 0x203   :  { %v1604_v12 = vpop.f32.mrf.mxu0  ;;  %1768 = vmatmul.mubr.f32.gmra.mxu1 %v830_v13 }
 0x204   :  { %1711 = vmatprep.mubr.f32.mxu0 %v1013_v11  ;;  %v798_v14 = vadd.f32 %v1604_v12, %v2316_v15 }
 0x205   :  { %v792_v16 = vpop.f32.mrf.mxu0  ;;  %v1660_v19 = vpop.f32.mrf.mxu1  ;;  %1712 = vmatmul.mubr.f32.gmra.mxu0 %v1014_v17 }
 0x206   :  { %v793_v20 = vadd.f32 %v2316_v15, %v792_v16  ;;  %v982_v21 = vadd.f32 %v1660_v19, %v2318_v18  ;;  %v832_v25 = vmax.f32 %v798_v14, 0.0 }
 0x207   :  { %v976_v22 = vpop.f32.mrf.mxu1 }
 0x208   :  { %v831_v23 = vmax.f32 %v793_v20, 0.0  ;;  %v977_v24 = vadd.f32 %v2318_v18, %v976_v22  ;;  %v1016_v27 = vmax.f32 %v982_v21, 0.0 }
 0x20a   :  { %v1015_v26 = vmax.f32 %v977_v24, 0.0  ;;  %1770 = vmatprep.mubr.f32.mxu1 %v831_v23 }
 0x20b   :  { %v1607_v28 = vpop.f32.mrf.mxu0  ;;  %1771 = vmatmul.mubr.f32.gmra.mxu1 %v832_v25 }
 0x20c   :  { %1714 = vmatprep.mubr.f32.mxu0 %v1015_v26  ;;  %v808_v29 = vadd.f32 %v1607_v28, %v2316_v15 }
 0x20d   :  { %v802_v30 = vpop.f32.mrf.mxu0  ;;  %v1663_v31 = vpop.f32.mrf.mxu1  ;;  %1715 = vmatmul.mubr.f32.gmra.mxu0 %v1016_v27 }
 0x20e   :  { %v803_v32 = vadd.f32 %v2316_v15, %v802_v30  ;;  %v992_v33 = vadd.f32 %v1663_v31, %v2318_v18  ;;  %v834_v37 = vmax.f32 %v808_v29, 0.0 }
 0x20f   :  { %v986_v34 = vpop.f32.mrf.mxu1 }
 0x210   :  { %v833_v35 = vmax.f32 %v803_v32, 0.0  ;;  %v987_v36 = vadd.f32 %v2318_v18, %v986_v34  ;;  %v1018_v39 = vmax.f32 %v992_v33, 0.0 }
 0x212   :  { %v1017_v38 = vmax.f32 %v987_v36, 0.0  ;;  %1773 = vmatprep.mubr.f32.mxu1 %v833_v35 }
 0x213   :  { %v1610_v40 = vpop.f32.mrf.mxu0  ;;  %1774 = vmatmul.mubr.f32.gmra.mxu1 %v834_v37 }
 0x214   :  { %1717 = vmatprep.mubr.f32.mxu0 %v1017_v38  ;;  %v818_v41 = vadd.f32 %v1610_v40, %v2316_v15 }
 0x215   :  { %v812_v42 = vpop.f32.mrf.mxu0  ;;  %v1666_v43 = vpop.f32.mrf.mxu1  ;;  %1718 = vmatmul.mubr.f32.gmra.mxu0 %v1018_v39 }
 0x216   :  { %v813_v44 = vadd.f32 %v2316_v15, %v812_v42  ;;  %v1002_v45 = vadd.f32 %v1666_v43, %v2318_v18  ;;  %v836_v49 = vmax.f32 %v818_v41, 0.0 }
 0x217   :  { %v996_v46 = vpop.f32.mrf.mxu1 }
 0x218   :  { %v835_v47 = vmax.f32 %v813_v44, 0.0  ;;  %v997_v48 = vadd.f32 %v2318_v18, %v996_v46  ;;  %v1020_v51 = vmax.f32 %v1002_v45, 0.0 }
 0x21a   :  { %v1019_v50 = vmax.f32 %v997_v48, 0.0  ;;  %1776 = vmatprep.mubr.f32.mxu1 %v835_v47 }
 0x21b   :  { %1777 = vmatmul.mubr.f32.gmra.mxu1 %v836_v49 }
 0x21c   :  { %1720 = vmatprep.mubr.f32.mxu0 %v1019_v50 }
 0x21d   :  { %1721 = vmatmul.mubr.f32.gmra.mxu0 %v1020_v51 }
 0x2a3   :  { %v1757_v52 = vpop.f32.mrf.mxu1 }
 0x2a5   :  { %v1701_v53 = vpop.f32.mrf.mxu0  ;;  %v1264_v56 = vpop.f32.mrf.mxu1 }
 0x2a6   :  { %v1270_v55 = vadd.f32 %v1757_v52, %v1701_v53 }
 0x2a7   :  { %v1119_v15 = vpop.f32.mrf.mxu0 }
 0x2a8   :  { %v1351_v57 = vadd.f32 %v2352_v54, %v1270_v55  ;;  %v1265_v58 = vadd.f32 %v1264_v56, %v1119_v15 }
 0x2aa   :  { %1367 = vst [vmem:[%s2430_s12 + $0x8] sm:$0xff] %v1351_v57  ;;  %v1350_v18 = vadd.f32 %v2352_v54, %v1265_v58 }
 0x2ab   :  { %v1760_v59 = vpop.f32.mrf.mxu1 }
 0x2ac   :  { %1366 = vst [vmem:[%s2430_s12] sm:$0xff] %v1350_v18 }
 0x2ad   :  { %v1704_v60 = vpop.f32.mrf.mxu0  ;;  %v1274_v62 = vpop.f32.mrf.mxu1 }
 0x2ae   :  { %v1280_v61 = vadd.f32 %v1760_v59, %v1704_v60 }
 0x2af   :  { %v1129_v63 = vpop.f32.mrf.mxu0 }
 0x2b0   :  { %v1353_v0 = vadd.f32 %v2352_v54, %v1280_v61  ;;  %v1275_v1 = vadd.f32 %v1274_v62, %v1129_v63 }
 0x2b2   :  { %1369 = vst [vmem:[%s2430_s12 + $0x18] sm:$0xff] %v1353_v0  ;;  %v1352_v2 = vadd.f32 %v2352_v54, %v1275_v1 }
 0x2b3   :  { %v1763_v3 = vpop.f32.mrf.mxu1 }
 0x2b4   :  { %1368 = vst [vmem:[%s2430_s12 + $0x10] sm:$0xff] %v1352_v2 }
 0x2b5   :  { %v1707_v4 = vpop.f32.mrf.mxu0  ;;  %v1284_v6 = vpop.f32.mrf.mxu1 }
 0x2b6   :  { %v1290_v5 = vadd.f32 %v1763_v3, %v1707_v4 }
 0x2b7   :  { %v1139_v7 = vpop.f32.mrf.mxu0 }
 0x2b8   :  { %v1355_v8 = vadd.f32 %v2352_v54, %v1290_v5  ;;  %v1285_v9 = vadd.f32 %v1284_v6, %v1139_v7 }
 0x2ba   :  { %1371 = vst [vmem:[%s2430_s12 + $0x28] sm:$0xff] %v1355_v8  ;;  %v1354_v10 = vadd.f32 %v2352_v54, %v1285_v9 }
 0x2bb   :  { %v1766_v13 = vpop.f32.mrf.mxu1 }
 0x2bc   :  { %1370 = vst [vmem:[%s2430_s12 + $0x20] sm:$0xff] %v1354_v10 }
 0x2bd   :  { %v1710_v11 = vpop.f32.mrf.mxu0  ;;  %v1294_v12 = vpop.f32.mrf.mxu1 }
 0x2be   :  { %v1300_v17 = vadd.f32 %v1766_v13, %v1710_v11 }
 0x2bf   :  { %v1149_v14 = vpop.f32.mrf.mxu0 }
 0x2c0   :  { %v1357_v16 = vadd.f32 %v2352_v54, %v1300_v17  ;;  %v1295_v19 = vadd.f32 %v1294_v12, %v1149_v14 }
 0x2c2   :  { %1373 = vst [vmem:[%s2430_s12 + $0x38] sm:$0xff] %v1357_v16  ;;  %v1356_v20 = vadd.f32 %v2352_v54, %v1295_v19 }
 0x2c3   :  { %v1769_v21 = vpop.f32.mrf.mxu1 }
 0x2c4   :  { %1372 = vst [vmem:[%s2430_s12 + $0x30] sm:$0xff] %v1356_v20 }
 0x2c5   :  { %v1713_v22 = vpop.f32.mrf.mxu0  ;;  %v1304_v24 = vpop.f32.mrf.mxu1 }
 0x2c6   :  { %v1310_v23 = vadd.f32 %v1769_v21, %v1713_v22 }
 0x2c7   :  { %v1159_v25 = vpop.f32.mrf.mxu0 }
 0x2c8   :  { %v1359_v26 = vadd.f32 %v2352_v54, %v1310_v23  ;;  %v1305_v27 = vadd.f32 %v1304_v24, %v1159_v25 }
 0x2ca   :  { %1375 = vst [vmem:[%s2430_s12 + $0x48] sm:$0xff] %v1359_v26  ;;  %v1358_v28 = vadd.f32 %v2352_v54, %v1305_v27 }
 0x2cb   :  { %v1772_v29 = vpop.f32.mrf.mxu1 }
 0x2cc   :  { %1374 = vst [vmem:[%s2430_s12 + $0x40] sm:$0xff] %v1358_v28 }
 0x2cd   :  { %v1716_v30 = vpop.f32.mrf.mxu0  ;;  %v1314_v32 = vpop.f32.mrf.mxu1 }
 0x2ce   :  { %v1320_v31 = vadd.f32 %v1772_v29, %v1716_v30 }
 0x2cf   :  { %v1169_v33 = vpop.f32.mrf.mxu0 }
 0x2d0   :  { %v1361_v34 = vadd.f32 %v2352_v54, %v1320_v31  ;;  %v1315_v35 = vadd.f32 %v1314_v32, %v1169_v33 }
 0x2d2   :  { %1377 = vst [vmem:[%s2430_s12 + $0x58] sm:$0xff] %v1361_v34  ;;  %v1360_v36 = vadd.f32 %v2352_v54, %v1315_v35 }
 0x2d3   :  { %v1775_v37 = vpop.f32.mrf.mxu1 }
 0x2d4   :  { %1376 = vst [vmem:[%s2430_s12 + $0x50] sm:$0xff] %v1360_v36 }
 0x2d5   :  { %v1719_v38 = vpop.f32.mrf.mxu0  ;;  %v1324_v40 = vpop.f32.mrf.mxu1 }
 0x2d6   :  { %v1330_v39 = vadd.f32 %v1775_v37, %v1719_v38 }
 0x2d7   :  { %v1179_v41 = vpop.f32.mrf.mxu0 }
 0x2d8   :  { %v1363_v42 = vadd.f32 %v2352_v54, %v1330_v39  ;;  %v1325_v43 = vadd.f32 %v1324_v40, %v1179_v41 }
 0x2da   :  { %1379 = vst [vmem:[%s2430_s12 + $0x68] sm:$0xff] %v1363_v42  ;;  %v1362_v44 = vadd.f32 %v2352_v54, %v1325_v43 }
 0x2db   :  { %v1778_v45 = vpop.f32.mrf.mxu1 }
 0x2dc   :  { %1378 = vst [vmem:[%s2430_s12 + $0x60] sm:$0xff] %v1362_v44 }
 0x2dd   :  { %v1722_v46 = vpop.f32.mrf.mxu0  ;;  %v1334_v48 = vpop.f32.mrf.mxu1 }
 0x2de   :  { %v1340_v47 = vadd.f32 %v1778_v45, %v1722_v46 }
 0x2df   :  { %v1189_v49 = vpop.f32.mrf.mxu0 }
 0x2e0   :  { %v1365_v50 = vadd.f32 %v2352_v54, %v1340_v47  ;;  %v1335_v51 = vadd.f32 %v1334_v48, %v1189_v49 }
 0x2e2   :  { %1381 = vst [vmem:[%s2430_s12 + $0x78] sm:$0xff] %v1365_v50  ;;  %v1364_v52 = vadd.f32 %v2352_v54, %v1335_v51 }
 0x2e4   :  { %1380 = vst [vmem:[%s2430_s12 + $0x70] sm:$0xff] %v1364_v52 }
 0x2e5   :  { %1386 = vsyncpa [#allocation3], 1 }
 0x2e6   :  { %1387 = vsyncpa [#allocation5], 1 }
 0x2e7   :  { %1388 = vsyncpa [#allocation8], 1 }
 0x2e8   :  { %1389 = vsyncpa [#allocation11], 1 }

</bundles_post_ra>
